<compile_context>
chip_gen: v6e
topology: v6e:2x2x1
jax: 0.10.0
libtpu: 0.0.40
codegen_flags: <defaults>
</compile_context>

<pallas_src>
import functools

import jax
import jax.numpy as jnp
from jax.experimental import pallas as pl
from jax.experimental.pallas import tpu as pltpu  # noqa: F401  (TPU backend)

EPS = 1e-5
LANE = 128


def _round_up(n, m):
    return ((n + m - 1) // m) * m


def _pad_axis(a, target, axis):
    pad = target - a.shape[axis]
    if pad <= 0:
        return a
    cfg = [(0, 0)] * a.ndim
    cfg[axis] = (0, pad)
    return jnp.pad(a, cfg)


def _full_spec(shape):
    # Whole-array block; everything fits comfortably in VMEM at these sizes.
    return pl.BlockSpec(shape, lambda: (0,) * len(shape))


def _make_fused_mlp_kernel(num_layers):
    """Fused MLP kernel: hidden linear+BN+ReLU layers + final linear, one call."""

    def kernel(*refs):
        # refs: x, (w_i, gamma_i, beta_i) * (num_layers-1), w_last, b_last, out
        h = refs[0][...].astype(jnp.float32)
        idx = 1
        for _ in range(num_layers - 1):
            w = refs[idx][...]
            gamma = refs[idx + 1][...]
            beta = refs[idx + 2][...]
            idx += 3
            # Linear on the MXU.  Bias intentionally omitted: a per-feature
            # constant added before BatchNorm is exactly cancelled by the mean
            # subtraction, so it is dead math.
            y = jnp.dot(h, w, preferred_element_type=jnp.float32)
            # BatchNorm1d (training-mode forward): per-feature batch mean and
            # biased variance, single-pass stats (two cross-sublane reduces).
            inv_n = 1.0 / y.shape[0]
            mean = jnp.sum(y, axis=0, keepdims=True) * inv_n
            mean_sq = jnp.sum(y * y, axis=0, keepdims=True) * inv_n
            var = jnp.maximum(mean_sq - mean * mean, 0.0)
            # Fold normalize + affine into one per-feature scale/shift so the
            # big [N, F] tile is touched exactly once: relu(y*scale + shift).
            scale = gamma * jax.lax.rsqrt(var + EPS)   # [1, F]
            shift = beta - mean * scale                # [1, F]
            h = jnp.maximum(y * scale + shift, 0.0)
        w_last = refs[idx][...]
        b_last = refs[idx + 1][...]
        o_ref = refs[idx + 2]
        y = jnp.dot(h, w_last, preferred_element_type=jnp.float32) + b_last
        o_ref[...] = y.astype(o_ref.dtype)

    return kernel


def mlp_forward(x, params, num_layers):
    """Whole MLP in one pallas_call.

    Feature dims are zero-padded up to a multiple of 128 (lane-dense weights,
    activations and output store); padding is inert (zero rows/cols through the
    matmuls, gamma/beta = 0 in padded lanes => padded lanes stay exactly 0) and
    is sliced off at the end.  The batch axis is not padded: BN statistics must
    be computed over the real batch only.
    """
    n, in_dim = x.shape
    out_dim = params[-1]["w"].shape[1]

    in_p = _round_up(in_dim, LANE)
    out_p = _round_up(out_dim, LANE)

    x_p = _pad_axis(x, in_p, axis=1)

    inputs = [x_p]
    in_specs = [_full_spec(x_p.shape)]

    if num_layers == 1:
        w = _pad_axis(_pad_axis(params[0]["w"], in_p, 0), out_p, 1)
        b = _pad_axis(params[0]["b"], out_p, 1)
        inputs += [w, b]
        in_specs += [_full_spec(w.shape), _full_spec(b.shape)]
    else:
        prev_p = in_p
        for i in range(num_layers - 1):
            p = params[i]
            f_p = _round_up(p["w"].shape[1], LANE)
            w = _pad_axis(_pad_axis(p["w"], prev_p, 0), f_p, 1)
            gamma = _pad_axis(p["gamma"], f_p, 1)
            beta = _pad_axis(p["beta"], f_p, 1)
            inputs += [w, gamma, beta]
            in_specs += [_full_spec(w.shape), _full_spec(gamma.shape),
                         _full_spec(beta.shape)]
            prev_p = f_p
        p = params[-1]
        w = _pad_axis(_pad_axis(p["w"], prev_p, 0), out_p, 1)
        b = _pad_axis(p["b"], out_p, 1)
        inputs += [w, b]
        in_specs += [_full_spec(w.shape), _full_spec(b.shape)]

    out_padded = pl.pallas_call(
        _make_fused_mlp_kernel(num_layers),
        out_shape=jax.ShapeDtypeStruct((n, out_p), x.dtype),
        in_specs=in_specs,
        out_specs=_full_spec((n, out_p)),
    )(*inputs)
    return out_padded[:, :out_dim]


def init_mlp_params(key, num_layers, input_dim, hidden_dim, output_dim):
    """Deterministic synthetic parameters (shapes mirror the PyTorch module)."""
    params = []
    if num_layers == 1:
        kw, kb = jax.random.split(key)
        w = jax.random.normal(kw, (input_dim, output_dim), jnp.float32) * 0.1
        b = jax.random.normal(kb, (1, output_dim), jnp.float32) * 0.1
        params.append({"w": w, "b": b})
        return params

    dims = [input_dim] + [hidden_dim] * (num_layers - 1) + [output_dim]
    keys = jax.random.split(key, 2 * num_layers)
    for i in range(num_layers):
        din, dout = dims[i], dims[i + 1]
        w = jax.random.normal(keys[2 * i], (din, dout), jnp.float32) * 0.1
        b = jax.random.normal(keys[2 * i + 1], (1, dout), jnp.float32) * 0.1
        layer = {"w": w, "b": b}
        if i < num_layers - 1:
            # BatchNorm1d affine params (fresh init: gamma=1, beta=0).
            layer["gamma"] = jnp.ones((1, dout), jnp.float32)
            layer["beta"] = jnp.zeros((1, dout), jnp.float32)
        params.append(layer)
    return params


def mlp_reference(x, params, num_layers):
    """Pure-JAX reference matching PyTorch forward (incl. bias before BN)."""
    if num_layers == 1:
        p = params[0]
        return x @ p["w"] + p["b"]
    x_ = x
    for i in range(num_layers - 1):
        p = params[i]
        y = x_ @ p["w"] + p["b"]
        mean = jnp.mean(y, axis=0, keepdims=True)
        var = jnp.mean((y - mean) ** 2, axis=0, keepdims=True)
        y = p["gamma"] * (y - mean) / jnp.sqrt(var + EPS) + p["beta"]
        x_ = jnp.maximum(y, 0.0)
    p = params[-1]
    return x_ @ p["w"] + p["b"]


if __name__ == "__main__":
    num_layers = 3
    input_dim = 16
    hidden_dim = 32
    output_dim = 8
    batch = 8

    key = jax.random.PRNGKey(0)
    kx, kp = jax.random.split(key)
    x = jax.random.normal(kx, (batch, input_dim), jnp.float32)
    params = init_mlp_params(kp, num_layers, input_dim, hidden_dim, output_dim)

    fwd = jax.jit(functools.partial(mlp_forward, num_layers=num_layers))
    out = jax.block_until_ready(fwd(x, params))

    ref = mlp_reference(x, params, num_layers)
    assert out.shape == (batch, output_dim)
    assert jnp.allclose(out, ref, atol=1e-4, rtol=1e-4), "mismatch vs reference"

    # Also exercise the num_layers == 1 path (plain Linear).
    params1 = init_mlp_params(kp, 1, input_dim, hidden_dim, output_dim)
    fwd1 = jax.jit(functools.partial(mlp_forward, num_layers=1))
    out1 = jax.block_until_ready(fwd1(x, params1))
    ref1 = mlp_reference(x, params1, 1)
    assert jnp.allclose(out1, ref1, atol=1e-4, rtol=1e-4), "mismatch (1-layer)"

    print("KERNEL_OK")
</pallas_src>

<mosaic_0001>
module attributes {stable_mosaic.version = 11 : i64} {
  func.func @kernel(%arg0: memref<8x128xf32, #tpu.memory_space<vmem>>, %arg1: memref<128x128xf32, #tpu.memory_space<vmem>>, %arg2: memref<1x128xf32, #tpu.memory_space<vmem>>, %arg3: memref<1x128xf32, #tpu.memory_space<vmem>>, %arg4: memref<128x128xf32, #tpu.memory_space<vmem>>, %arg5: memref<1x128xf32, #tpu.memory_space<vmem>>, %arg6: memref<1x128xf32, #tpu.memory_space<vmem>>, %arg7: memref<128x128xf32, #tpu.memory_space<vmem>>, %arg8: memref<1x128xf32, #tpu.memory_space<vmem>>, %arg9: memref<8x128xf32, #tpu.memory_space<vmem>>) attributes {dimension_semantics = [], scalar_prefetch = 0 : i64, scratch_operands = 0 : i64, tpu.core_type = #tpu.core_type<tc>} {
    %c0 = arith.constant 0 : index
    %c0_0 = arith.constant 0 : index
    %0 = vector.load %arg0[%c0, %c0_0] : memref<8x128xf32, #tpu.memory_space<vmem>>, vector<8x128xf32>
    %c0_1 = arith.constant 0 : index
    %c0_2 = arith.constant 0 : index
    %1 = vector.load %arg1[%c0_1, %c0_2] : memref<128x128xf32, #tpu.memory_space<vmem>>, vector<128x128xf32>
    %c0_3 = arith.constant 0 : index
    %c0_4 = arith.constant 0 : index
    %2 = vector.load %arg2[%c0_3, %c0_4] : memref<1x128xf32, #tpu.memory_space<vmem>>, vector<1x128xf32>
    %c0_5 = arith.constant 0 : index
    %c0_6 = arith.constant 0 : index
    %3 = vector.load %arg3[%c0_5, %c0_6] : memref<1x128xf32, #tpu.memory_space<vmem>>, vector<1x128xf32>
    %cst = arith.constant dense<0.000000e+00> : vector<8x128xf32>
    %4 = tpu.matmul %0, %1, %cst {dimension_numbers = #tpu.dot_dimension_numbers<[1], [0], [0], [1], [0, 0, 1, 1], [], []>} : vector<8x128xf32>, vector<128x128xf32>, vector<8x128xf32> -> vector<8x128xf32>
    %cst_7 = arith.constant dense<0.000000e+00> : vector<128xf32>
    %5 = vector.multi_reduction <add>, %4, %cst_7 [0] : vector<8x128xf32> to vector<128xf32>
    %6 = vector.shape_cast %5 : vector<128xf32> to vector<1x128xf32>
    %cst_8 = arith.constant 1.250000e-01 : f32
    %7 = vector.broadcast %cst_8 : f32 to vector<1x128xf32>
    %8 = arith.mulf %6, %7 : vector<1x128xf32>
    %9 = arith.mulf %4, %4 : vector<8x128xf32>
    %cst_9 = arith.constant dense<0.000000e+00> : vector<128xf32>
    %10 = vector.multi_reduction <add>, %9, %cst_9 [0] : vector<8x128xf32> to vector<128xf32>
    %11 = vector.shape_cast %10 : vector<128xf32> to vector<1x128xf32>
    %cst_10 = arith.constant 1.250000e-01 : f32
    %12 = vector.broadcast %cst_10 : f32 to vector<1x128xf32>
    %13 = arith.mulf %11, %12 : vector<1x128xf32>
    %14 = arith.mulf %8, %8 : vector<1x128xf32>
    %15 = arith.subf %13, %14 : vector<1x128xf32>
    %cst_11 = arith.constant 0.000000e+00 : f32
    %16 = vector.broadcast %cst_11 : f32 to vector<1x128xf32>
    %17 = arith.maximumf %15, %16 : vector<1x128xf32>
    %cst_12 = arith.constant 9.99999974E-6 : f32
    %18 = vector.broadcast %cst_12 : f32 to vector<1x128xf32>
    %19 = arith.addf %17, %18 : vector<1x128xf32>
    %20 = math.rsqrt %19 : vector<1x128xf32>
    %21 = arith.mulf %2, %20 : vector<1x128xf32>
    %22 = arith.mulf %8, %21 : vector<1x128xf32>
    %23 = arith.subf %3, %22 : vector<1x128xf32>
    %24 = vector.broadcast %21 : vector<1x128xf32> to vector<8x128xf32>
    %25 = arith.mulf %4, %24 : vector<8x128xf32>
    %26 = vector.broadcast %23 : vector<1x128xf32> to vector<8x128xf32>
    %27 = arith.addf %25, %26 : vector<8x128xf32>
    %cst_13 = arith.constant 0.000000e+00 : f32
    %28 = vector.broadcast %cst_13 : f32 to vector<8x128xf32>
    %29 = arith.maximumf %27, %28 : vector<8x128xf32>
    %c0_14 = arith.constant 0 : index
    %c0_15 = arith.constant 0 : index
    %30 = vector.load %arg4[%c0_14, %c0_15] : memref<128x128xf32, #tpu.memory_space<vmem>>, vector<128x128xf32>
    %c0_16 = arith.constant 0 : index
    %c0_17 = arith.constant 0 : index
    %31 = vector.load %arg5[%c0_16, %c0_17] : memref<1x128xf32, #tpu.memory_space<vmem>>, vector<1x128xf32>
    %c0_18 = arith.constant 0 : index
    %c0_19 = arith.constant 0 : index
    %32 = vector.load %arg6[%c0_18, %c0_19] : memref<1x128xf32, #tpu.memory_space<vmem>>, vector<1x128xf32>
    %cst_20 = arith.constant dense<0.000000e+00> : vector<8x128xf32>
    %33 = tpu.matmul %29, %30, %cst_20 {dimension_numbers = #tpu.dot_dimension_numbers<[1], [0], [0], [1], [0, 0, 1, 1], [], []>} : vector<8x128xf32>, vector<128x128xf32>, vector<8x128xf32> -> vector<8x128xf32>
    %cst_21 = arith.constant dense<0.000000e+00> : vector<128xf32>
    %34 = vector.multi_reduction <add>, %33, %cst_21 [0] : vector<8x128xf32> to vector<128xf32>
    %35 = vector.shape_cast %34 : vector<128xf32> to vector<1x128xf32>
    %cst_22 = arith.constant 1.250000e-01 : f32
    %36 = vector.broadcast %cst_22 : f32 to vector<1x128xf32>
    %37 = arith.mulf %35, %36 : vector<1x128xf32>
    %38 = arith.mulf %33, %33 : vector<8x128xf32>
    %cst_23 = arith.constant dense<0.000000e+00> : vector<128xf32>
    %39 = vector.multi_reduction <add>, %38, %cst_23 [0] : vector<8x128xf32> to vector<128xf32>
    %40 = vector.shape_cast %39 : vector<128xf32> to vector<1x128xf32>
    %cst_24 = arith.constant 1.250000e-01 : f32
    %41 = vector.broadcast %cst_24 : f32 to vector<1x128xf32>
    %42 = arith.mulf %40, %41 : vector<1x128xf32>
    %43 = arith.mulf %37, %37 : vector<1x128xf32>
    %44 = arith.subf %42, %43 : vector<1x128xf32>
    %cst_25 = arith.constant 0.000000e+00 : f32
    %45 = vector.broadcast %cst_25 : f32 to vector<1x128xf32>
    %46 = arith.maximumf %44, %45 : vector<1x128xf32>
    %cst_26 = arith.constant 9.99999974E-6 : f32
    %47 = vector.broadcast %cst_26 : f32 to vector<1x128xf32>
    %48 = arith.addf %46, %47 : vector<1x128xf32>
    %49 = math.rsqrt %48 : vector<1x128xf32>
    %50 = arith.mulf %31, %49 : vector<1x128xf32>
    %51 = arith.mulf %37, %50 : vector<1x128xf32>
    %52 = arith.subf %32, %51 : vector<1x128xf32>
    %53 = vector.broadcast %50 : vector<1x128xf32> to vector<8x128xf32>
    %54 = arith.mulf %33, %53 : vector<8x128xf32>
    %55 = vector.broadcast %52 : vector<1x128xf32> to vector<8x128xf32>
    %56 = arith.addf %54, %55 : vector<8x128xf32>
    %cst_27 = arith.constant 0.000000e+00 : f32
    %57 = vector.broadcast %cst_27 : f32 to vector<8x128xf32>
    %58 = arith.maximumf %56, %57 : vector<8x128xf32>
    %c0_28 = arith.constant 0 : index
    %c0_29 = arith.constant 0 : index
    %59 = vector.load %arg7[%c0_28, %c0_29] : memref<128x128xf32, #tpu.memory_space<vmem>>, vector<128x128xf32>
    %c0_30 = arith.constant 0 : index
    %c0_31 = arith.constant 0 : index
    %60 = vector.load %arg8[%c0_30, %c0_31] : memref<1x128xf32, #tpu.memory_space<vmem>>, vector<1x128xf32>
    %cst_32 = arith.constant dense<0.000000e+00> : vector<8x128xf32>
    %61 = tpu.matmul %58, %59, %cst_32 {dimension_numbers = #tpu.dot_dimension_numbers<[1], [0], [0], [1], [0, 0, 1, 1], [], []>} : vector<8x128xf32>, vector<128x128xf32>, vector<8x128xf32> -> vector<8x128xf32>
    %62 = vector.broadcast %60 : vector<1x128xf32> to vector<8x128xf32>
    %63 = arith.addf %61, %62 : vector<8x128xf32>
    %c0_33 = arith.constant 0 : index
    %c0_34 = arith.constant 0 : index
    %64 = vector.load %arg9[%c0_33, %c0_34] : memref<8x128xf32, #tpu.memory_space<vmem>>, vector<8x128xf32>
    tpu.vector_store %arg9[%c0_33, %c0_34], %63 {strides = array<i32>} : memref<8x128xf32, #tpu.memory_space<vmem>>, vector<8x128xf32>,
    return
  }
}

</mosaic_0001>

<bundles_post_ra>
// kernel: mlp_forward.1
= control target key start
LH: loop header
LB: loop body
LE: loop exit
PB: predicated region body
PF: predicated region fallthrough
CT: control target
= control target key end

     0   :  { %v580_v1 = vmov 0.0   ;;  %vm581_vm0 = vmmov 0   ;;  %s858_s0 = inlined_call_operand.vmem [shape: f32[8,128], index: 0, kind: input, shape index: {}]   ;;  %s859_s1 = inlined_call_operand.vmem [shape: f32[128,128], index: 1, kind: input, shape index: {}]   ;;  %s860_s2 = inlined_call_operand.vmem [shape: f32[1,128], index: 2, kind: input, shape index: {}]   ;;  %s861_s3 = inlined_call_operand.vmem [shape: f32[1,128], index: 3, kind: input, shape index: {}]   ;;  %s862_s4 = inlined_call_operand.vmem [shape: f32[128,128], index: 4, kind: input, shape index: {}]   ;;  %s863_s5 = inlined_call_operand.vmem [shape: f32[1,128], index: 5, kind: input, shape index: {}]   ;;  %s864_s6 = inlined_call_operand.vmem [shape: f32[1,128], index: 6, kind: input, shape index: {}]   ;;  %s865_s7 = inlined_call_operand.vmem [shape: f32[128,128], index: 7, kind: input, shape index: {}]   ;;  %s866_s8 = inlined_call_operand.vmem [shape: f32[1,128], index: 8, kind: input, shape index: {}]   ;;  %s867_s9 = inlined_call_operand.hbm [shape: f32[8,128], index: 9, kind: output, shape index: {}]  }
   0x1   :  { %v49_v0 = vld [vmem:[%s859_s1 + $0x78] sm:$0xff]  ;;  %446 = vmatprep.subr.mxu0 %v580_v1  ;;  %v48_v2 = vld [vmem:[%s859_s1 + $0x70] sm:$0xff]  ;;  %478 = vmatprep.mubr.msk.f32.mxu0 %vm581_vm0, %v580_v1  ;;  %v47_v3 = vld [vmem:[%s859_s1 + $0x68] sm:$0xff] }
   0x2   :  { %447 = vmatpush3.msra.mxu0 %v49_v0  ;;  %481 = vmatprep.subr.mxu1 %v580_v1  ;;  %v46_v4 = vld [vmem:[%s859_s1 + $0x60] sm:$0xff] }
   0x3   :  { %448 = vmatprep.subr.mxu0 %v580_v1  ;;  %513 = vmatprep.mubr.msk.f32.mxu1 %vm581_vm0, %v580_v1 }
   0x4   :  { %449 = vmatpush3.msra.mxu0 %v48_v2 }
   0x5   :  { %450 = vmatprep.subr.mxu0 %v580_v1 }
   0x6   :  { %451 = vmatpush3.msra.mxu0 %v47_v3 }
   0x7   :  { %14 = vsyncpa [#allocation3], 0  ;;  %452 = vmatprep.subr.mxu0 %v580_v1  ;;  %v45_v5 = vld [vmem:[%s859_s1 + $0x58] sm:$0xff]  ;;  %v44_v6 = vld [vmem:[%s859_s1 + $0x50] sm:$0xff]  ;;  %v146_v55 = vlaneseq }
   0x8   :  { %453 = vmatpush3.msra.mxu0 %v46_v4  ;;  %v43_v7 = vld [vmem:[%s859_s1 + $0x48] sm:$0xff]  ;;  %v42_v8 = vld [vmem:[%s859_s1 + $0x40] sm:$0xff]  ;;  %v41_v9 = vld [vmem:[%s859_s1 + $0x38] sm:$0xff] }
   0x9   :  { %454 = vmatprep.subr.mxu0 %v580_v1  ;;  %v40_v10 = vld [vmem:[%s859_s1 + $0x30] sm:$0xff]  ;;  %v39_v11 = vld [vmem:[%s859_s1 + $0x28] sm:$0xff]  ;;  %v38_v12 = vld [vmem:[%s859_s1 + $0x20] sm:$0xff]  ;;  %v147_v56 = vshrl.u32 %v146_v55, 7 }
   0xa   :  { %455 = vmatpush3.msra.mxu0 %v45_v5  ;;  %v37_v13 = vld [vmem:[%s859_s1 + $0x18] sm:$0xff]  ;;  %v36_v14 = vld [vmem:[%s859_s1 + $0x10] sm:$0xff]  ;;  %v35_v15 = vld [vmem:[%s859_s1 + $0x8] sm:$0xff] }
   0xb   :  { %456 = vmatprep.subr.mxu0 %v580_v1  ;;  %v34_v16 = vld [vmem:[%s859_s1] sm:$0xff]  ;;  %v175_v18 = vld [vmem:[%s862_s4 + $0x78] sm:$0xff]  ;;  %v174_v19 = vld [vmem:[%s862_s4 + $0x70] sm:$0xff]  ;;  %v774_v58 = vsub.s32 0, %v147_v56 }
   0xc   :  { %457 = vmatpush3.msra.mxu0 %v44_v6  ;;  %v33_v17 = vld [vmem:[%s858_s0] sm:$0xff]  ;;  %482 = vmatpush3.msra.mxu1 %v175_v18  ;;  %v173_v20 = vld [vmem:[%s862_s4 + $0x68] sm:$0xff]  ;;  %v171_v22 = vld [vmem:[%s862_s4 + $0x58] sm:$0xff] }
   0xd   :  { %458 = vmatprep.subr.mxu0 %v580_v1  ;;  %483 = vmatprep.subr.mxu1 %v580_v1  ;;  %v172_v21 = vld [vmem:[%s862_s4 + $0x60] sm:$0xff]  ;;  %v170_v23 = vld [vmem:[%s862_s4 + $0x50] sm:$0xff]  ;;  %v169_v24 = vld [vmem:[%s862_s4 + $0x48] sm:$0xff] }
   0xe   :  { %459 = vmatpush3.msra.mxu0 %v43_v7  ;;  %484 = vmatpush3.msra.mxu1 %v174_v19  ;;  %v168_v25 = vld [vmem:[%s862_s4 + $0x40] sm:$0xff]  ;;  %v167_v26 = vld [vmem:[%s862_s4 + $0x38] sm:$0xff]  ;;  %v166_v27 = vld [vmem:[%s862_s4 + $0x30] sm:$0xff] }
   0xf   :  { %460 = vmatprep.subr.mxu0 %v580_v1  ;;  %485 = vmatprep.subr.mxu1 %v580_v1  ;;  %v165_v28 = vld [vmem:[%s862_s4 + $0x28] sm:$0xff]  ;;  %v164_v29 = vld [vmem:[%s862_s4 + $0x20] sm:$0xff]  ;;  %v163_v30 = vld [vmem:[%s862_s4 + $0x18] sm:$0xff] }
  0x10   :  { %461 = vmatpush3.msra.mxu0 %v42_v8  ;;  %486 = vmatpush3.msra.mxu1 %v173_v20  ;;  %v162_v31 = vld [vmem:[%s862_s4 + $0x10] sm:$0xff]  ;;  %v161_v32 = vld [vmem:[%s862_s4 + $0x8] sm:$0xff]  ;;  %v160_v33 = vld [vmem:[%s862_s4] sm:$0xff] }
  0x11   :  { %462 = vmatprep.subr.mxu0 %v580_v1  ;;  %487 = vmatprep.subr.mxu1 %v580_v1  ;;  %v50_v57 = vld [vmem:[%s860_s2] sm:$0x1]  ;;  %v301_v6 = vld [vmem:[%s865_s7 + $0x78] sm:$0xff]  ;;  %v300_v7 = vld [vmem:[%s865_s7 + $0x70] sm:$0xff] }
  0x12   :  { %463 = vmatpush3.msra.mxu0 %v41_v9  ;;  %488 = vmatpush3.msra.mxu1 %v172_v21  ;;  %v51_v61 = vld [vmem:[%s861_s3] sm:$0x1]  ;;  %v299_v8 = vld [vmem:[%s865_s7 + $0x68] sm:$0xff]  ;;  %v289_v18 = vld [vmem:[%s865_s7 + $0x18] sm:$0xff] }
  0x13   :  { %464 = vmatprep.subr.mxu0 %v580_v1  ;;  %489 = vmatprep.subr.mxu1 %v580_v1  ;;  %v298_v9 = vld [vmem:[%s865_s7 + $0x60] sm:$0xff]  ;;  %v288_v19 = vld [vmem:[%s865_s7 + $0x10] sm:$0xff]  ;;  %v287_v20 = vld [vmem:[%s865_s7 + $0x8] sm:$0xff] }
  0x14   :  { %465 = vmatpush3.msra.mxu0 %v40_v10  ;;  %490 = vmatpush3.msra.mxu1 %v171_v22  ;;  %v297_v10 = vld [vmem:[%s865_s7 + $0x58] sm:$0xff]  ;;  %v286_v21 = vld [vmem:[%s865_s7] sm:$0xff] }
  0x15   :  { %466 = vmatprep.subr.mxu0 %v580_v1  ;;  %491 = vmatprep.subr.mxu1 %v580_v1 }
  0x16   :  { %467 = vmatpush3.msra.mxu0 %v39_v11  ;;  %492 = vmatpush3.msra.mxu1 %v170_v23  ;;  %v296_v11 = vld [vmem:[%s865_s7 + $0x50] sm:$0xff] }
  0x17   :  { %468 = vmatprep.subr.mxu0 %v580_v1  ;;  %493 = vmatprep.subr.mxu1 %v580_v1 }
  0x18   :  { %469 = vmatpush3.msra.mxu0 %v38_v12  ;;  %494 = vmatpush3.msra.mxu1 %v169_v24  ;;  %v295_v12 = vld [vmem:[%s865_s7 + $0x48] sm:$0xff] }
  0x19   :  { %470 = vmatprep.subr.mxu0 %v580_v1  ;;  %495 = vmatprep.subr.mxu1 %v580_v1 }
  0x1a   :  { %471 = vmatpush3.msra.mxu0 %v37_v13  ;;  %496 = vmatpush3.msra.mxu1 %v168_v25  ;;  %v294_v13 = vld [vmem:[%s865_s7 + $0x40] sm:$0xff] }
  0x1b   :  { %472 = vmatprep.subr.mxu0 %v580_v1  ;;  %497 = vmatprep.subr.mxu1 %v580_v1 }
  0x1c   :  { %473 = vmatpush3.msra.mxu0 %v36_v14  ;;  %498 = vmatpush3.msra.mxu1 %v167_v26  ;;  %v293_v14 = vld [vmem:[%s865_s7 + $0x38] sm:$0xff] }
  0x1d   :  { %474 = vmatprep.subr.mxu0 %v580_v1  ;;  %499 = vmatprep.subr.mxu1 %v580_v1 }
  0x1e   :  { %475 = vmatpush3.msra.mxu0 %v35_v15  ;;  %500 = vmatpush3.msra.mxu1 %v166_v27  ;;  %v292_v15 = vld [vmem:[%s865_s7 + $0x30] sm:$0xff] }
  0x1f   :  { %476 = vmatprep.subr.mxu0 %v580_v1  ;;  %501 = vmatprep.subr.mxu1 %v580_v1 }
  0x20   :  { %477 = vmatpush3.msra.mxu0 %v34_v16  ;;  %502 = vmatpush3.msra.mxu1 %v165_v28  ;;  %v291_v16 = vld [vmem:[%s865_s7 + $0x28] sm:$0xff] }
  0x21   :  { %479 = vmatmul.mubr.f32.vlgmr.msra.gmra.mxu0 %v33_v17  ;;  %516 = vmatprep.subr.mxu0 %v580_v1  ;;  %v290_v17 = vld [vmem:[%s865_s7 + $0x20] sm:$0xff] }
  0x22   :  { %548 = vmatprep.mubr.msk.f32.mxu0 %vm581_vm0, %v580_v1  ;;  %503 = vmatprep.subr.mxu1 %v580_v1 }
  0x23   :  { %504 = vmatpush3.msra.mxu1 %v164_v29  ;;  %517 = vmatpush3.msra.mxu0 %v301_v6 }
  0x24   :  { %505 = vmatprep.subr.mxu1 %v580_v1  ;;  %518 = vmatprep.subr.mxu0 %v580_v1 }
  0x25   :  { %506 = vmatpush3.msra.mxu1 %v163_v30  ;;  %519 = vmatpush3.msra.mxu0 %v300_v7 }
  0x26   :  { %507 = vmatprep.subr.mxu1 %v580_v1  ;;  %520 = vmatprep.subr.mxu0 %v580_v1 }
  0x27   :  { %508 = vmatpush3.msra.mxu1 %v162_v31  ;;  %521 = vmatpush3.msra.mxu0 %v299_v8 }
  0x28   :  { %509 = vmatprep.subr.mxu1 %v580_v1  ;;  %522 = vmatprep.subr.mxu0 %v580_v1 }
  0x29   :  { %510 = vmatpush3.msra.mxu1 %v161_v32  ;;  %523 = vmatpush3.msra.mxu0 %v298_v9 }
  0x2a   :  { %511 = vmatprep.subr.mxu1 %v580_v1  ;;  %524 = vmatprep.subr.mxu0 %v580_v1 }
  0x2b   :  { %512 = vmatpush3.msra.mxu1 %v160_v33  ;;  %525 = vmatpush3.msra.mxu0 %v297_v10 }
  0x2c   :  { %526 = vmatprep.subr.mxu0 %v580_v1 }
  0x2d   :  { %527 = vmatpush3.msra.mxu0 %v296_v11 }
  0x2e   :  { %528 = vmatprep.subr.mxu0 %v580_v1 }
  0x2f   :  { %529 = vmatpush3.msra.mxu0 %v295_v12 }
  0x30   :  { %530 = vmatprep.subr.mxu0 %v580_v1 }
  0x31   :  { %531 = vmatpush3.msra.mxu0 %v294_v13 }
  0x32   :  { %532 = vmatprep.subr.mxu0 %v580_v1 }
  0x33   :  { %533 = vmatpush3.msra.mxu0 %v293_v14 }
  0x34   :  { %534 = vmatprep.subr.mxu0 %v580_v1 }
  0x35   :  { %535 = vmatpush3.msra.mxu0 %v292_v15 }
  0x36   :  { %536 = vmatprep.subr.mxu0 %v580_v1 }
  0x37   :  { %537 = vmatpush3.msra.mxu0 %v291_v16 }
  0x38   :  { %538 = vmatprep.subr.mxu0 %v580_v1 }
  0x39   :  { %539 = vmatpush3.msra.mxu0 %v290_v17 }
  0x3a   :  { %540 = vmatprep.subr.mxu0 %v580_v1 }
  0x3b   :  { %541 = vmatpush3.msra.mxu0 %v289_v18 }
  0x3c   :  { %542 = vmatprep.subr.mxu0 %v580_v1 }
  0x3d   :  { %543 = vmatpush3.msra.mxu0 %v288_v19 }
  0x3e   :  { %544 = vmatprep.subr.mxu0 %v580_v1 }
  0x3f   :  { %545 = vmatpush3.msra.mxu0 %v287_v20 }
  0x40   :  { %546 = vmatprep.subr.mxu0 %v580_v1 }
  0x41   :  { %547 = vmatpush3.msra.mxu0 %v286_v21 }
  0xe1   :  { %v118_v34 = vpop.f32.mrf.mxu0 }
  0xe2   :  { %v122_v35 = vrot.slane %v118_v34, 4  ;;  %v129_v36 = vmul.f32 %v118_v34, %v118_v34 }
  0xe3   :  { %v480_v37 = vpop.f32.mrf.mxu0 }
  0xe4   :  { %v123_v38 = vadd.f32 %v122_v35, %v118_v34  ;;  %v130_v39 = vrot.slane %v129_v36, 4 }
  0xe6   :  { %v124_v40 = vrot.slane %v123_v38, 2  ;;  %v131_v41 = vadd.f32 %v130_v39, %v129_v36 }
  0xe8   :  { %v125_v42 = vadd.f32 %v124_v40, %v123_v38  ;;  %v132_v43 = vrot.slane %v131_v41, 2 }
  0xea   :  { %v126_v44 = vrot.slane %v125_v42, 1  ;;  %v133_v45 = vadd.f32 %v132_v43, %v131_v41 }
  0xec   :  { %v127_v46 = vadd.f32 %v126_v44, %v125_v42  ;;  %v134_v47 = vrot.slane %v133_v45, 1  ;;  %v176_v42 = vld [vmem:[%s863_s5] sm:$0x1]  ;;  %s582_s5 = smov [#allocation2]  }
  0xed   :  { %s386_s20 = sshll.u32 %s582_s5, 4  ;;  %s387_s20 = int_to_ptr.vmem [resolvable:$true] %s386_s20 }
  0xee   :  { %v128_v48 = vmul.f32 0.125, %v127_v46  ;;  %v135_v49 = vadd.f32 %v134_v47, %v133_v45  ;;  %v177_v45 = vld [vmem:[%s864_s6] sm:$0x1]  ;;  %s558_s6 = scalar_lea.vmem %s387_s20, 128  ;;  %p563_p1 = scmp.lt.s32.totalorder %s387_s20, %s387_s20 }
  0xef   :  { %p559_p0 = scmp.ne.s32.totalorder %s387_s20, %s558_s6  ;;  %p564_p2 = scmp.lt.s32.totalorder %s558_s6, %s558_s6 }
  0xf0   :  { %v136_v50 = vmul.f32 0.125, %v135_v49  ;;  %v137_v51 = vmul.f32 %v128_v48, %v128_v48 }
  0xf1   :  { %p565_p3 = por %p564_p2, %p563_p1 }
  0xf2   :  { %v138_v52 = vsub.f32 %v136_v50, %v137_v51 }
  0xf3   :  { %p566_p4 = pnand %p565_p3, %p559_p0 }
  0xf4   :  { %v139_v53 = vmax.f32 %v138_v52, 0.0 }
  0xf6   :  { %v140_v54 = vadd.f32 1e-05, %v139_v53  ;;  %v394_v53 = vld [vmem:[%s866_s8] ss:$0 sm:$0xff] }
  0xf8   :  { %554 = vrsqrt.f32 %v140_v54 }
 0x105   :  { %v555_v59 = vpop.eup %554 }
 0x106   :  { %v142_v60 = vmul.f32 %v555_v59, %v50_v57 }
 0x108   :  { %v149_v62 = vrot.slane %v142_v60, %v774_v58  ;;  %v143_v63 = vmul.f32 %v142_v60, %v128_v48 }
 0x10a   :  { %v144_v0 = vsub.f32 %v51_v61, %v143_v63  ;;  %v151_v2 = vmul.f32 %v149_v62, %v118_v34 }
 0x10c   :  { %v156_v3 = vrot.slane %v144_v0, %v774_v58 }
 0x10e   :  { %v158_v4 = vadd.f32 %v156_v3, %v151_v2 }
 0x110   :  { %v159_v5 = vmax.f32 %v158_v4, 0.0 }
 0x112   :  { %514 = vmatmul.mubr.f32.vlgmr.msra.gmra.mxu1 %v159_v5 }
 0x1d2   :  { %v244_v22 = vpop.f32.mrf.mxu1 }
 0x1d3   :  { %v248_v23 = vrot.slane %v244_v22, 4  ;;  %v255_v24 = vmul.f32 %v244_v22, %v244_v22 }
 0x1d4   :  { %v515_v25 = vpop.f32.mrf.mxu1 }
 0x1d5   :  { %v249_v26 = vadd.f32 %v248_v23, %v244_v22  ;;  %v256_v27 = vrot.slane %v255_v24, 4 }
 0x1d7   :  { %v250_v28 = vrot.slane %v249_v26, 2  ;;  %v257_v29 = vadd.f32 %v256_v27, %v255_v24 }
 0x1d9   :  { %v251_v30 = vadd.f32 %v250_v28, %v249_v26  ;;  %v258_v31 = vrot.slane %v257_v29, 2 }
 0x1db   :  { %v252_v32 = vrot.slane %v251_v30, 1  ;;  %v259_v33 = vadd.f32 %v258_v31, %v257_v29 }
 0x1dd   :  { %v253_v34 = vadd.f32 %v252_v32, %v251_v30  ;;  %v260_v35 = vrot.slane %v259_v33, 1 }
 0x1df   :  { %v254_v36 = vmul.f32 0.125, %v253_v34  ;;  %v261_v37 = vadd.f32 %v260_v35, %v259_v33 }
 0x1e1   :  { %v262_v38 = vmul.f32 0.125, %v261_v37  ;;  %v263_v39 = vmul.f32 %v254_v36, %v254_v36 }
 0x1e3   :  { %v264_v1 = vsub.f32 %v262_v38, %v263_v39 }
 0x1e5   :  { %v265_v40 = vmax.f32 %v264_v1, 0.0 }
 0x1e7   :  { %v266_v41 = vadd.f32 1e-05, %v265_v40 }
 0x1e9   :  { %556 = vrsqrt.f32 %v266_v41 }
 0x1f6   :  { %v557_v43 = vpop.eup %556 }
 0x1f7   :  { %v268_v44 = vmul.f32 %v557_v43, %v176_v42 }
 0x1f9   :  { %v269_v46 = vmul.f32 %v268_v44, %v254_v36  ;;  %v275_v47 = vrot.slane %v268_v44, %v774_v58 }
 0x1fb   :  { %v270_v48 = vsub.f32 %v177_v45, %v269_v46  ;;  %v277_v49 = vmul.f32 %v275_v47, %v244_v22 }
 0x1fd   :  { %v282_v50 = vrot.slane %v270_v48, %v774_v58 }
 0x1ff   :  { %v284_v51 = vadd.f32 %v282_v50, %v277_v49 }
 0x201   :  { %v285_v52 = vmax.f32 %v284_v51, 0.0 }
 0x203   :  { %549 = vmatmul.mubr.f32.vlgmr.msra.gmra.mxu0 %v285_v52 }
 0x2c3   :  { %v375_v54 = vpop.f32.mrf.mxu0 }
 0x2c4   :  { %v376_v55 = vadd.f32 %v394_v53, %v375_v54 }
 0x2c5   :  { %v550_v56 = vpop.f32.mrf.mxu0 }
 0x2c6   :  { %379 = vst [vmem:[#allocation2] sm:$0xff] %v376_v55 }
 0x2c7   :  { %569 = shalt.err (!%p566_p4)
}
 0x2c8   :  { %389 = dma.vmem_to_hbm [thread:$0]  %s387_s20, 128, %s867_s9, [#allocation3]  }
 0x2c9   :  { %578 = dma.done.wait [#allocation3], 128  }
 0x2ca   :  { %579 = vsyncadd [#allocation3], 4294967168 }
 0x2cb   :  { %393 = vsyncpa [#allocation3], 1 }

</bundles_post_ra>
